<compile_context>
chip_gen: v7x
topology: tpu7x:2x2x1
jax: 0.10.0
libtpu: 0.0.40
codegen_flags: <defaults>
</compile_context>

<pallas_src>
import jax
import jax.numpy as jnp
from jax.experimental import pallas as pl
from jax.experimental.pallas import tpu as pltpu

_INV_SQRT2 = 0.7071067811865476


def _round_up(x, m):
    return (x + m - 1) // m * m


def _vmem_capacity_bytes():
    try:
        return int(pltpu.get_tpu_info().vmem_capacity_bytes)
    except Exception:
        return 128 * 1024 * 1024  # conservative fallback


def _make_ffn_kernel(th, use_acc, approximate_gelu):
    """One (row_tile, hidden_tile) step of the fused FFN.

    h      = x @ [W1a | W1g]_chunk + [b1a | b1g]_chunk   (single MXU pass, f32)
    a, g   = h[:, :th], h[:, th:]
    z      = a * gelu(g)
    acc   += z @ W2_chunk                                 (f32 accumulation)
    out    = acc + b2                                     (last hidden chunk)
    """

    def kernel(x_ref, w1_ref, b1_ref, w2_ref, b2_ref, o_ref, *scratch):
        k = pl.program_id(1)
        acc_ref = scratch[0] if use_acc else o_ref  # f32 out -> accumulate in place

        @pl.when(k == 0)
        def _init():
            acc_ref[...] = jnp.zeros_like(acc_ref)

        x = x_ref[...]  # native dtype straight into the MXU

        # Fused first projection: [a | gate] halves in one matmul, f32 accum.
        h = jnp.dot(x, w1_ref[...], preferred_element_type=jnp.float32)
        h = h + b1_ref[pl.ds(k, 1), :].astype(jnp.float32)  # resident bias, row k

        a = h[:, :th]
        g = h[:, th:]
        if approximate_gelu:
            gelu_g = jax.nn.gelu(g, approximate=True)       # tanh -> EUP
        else:
            gelu_g = 0.5 * g * (1.0 + jax.lax.erf(g * _INV_SQRT2))  # exact (PyTorch)
        z = a * gelu_g

        # Second projection for this hidden chunk; accumulate in f32.
        acc_ref[...] += jnp.dot(z.astype(w2_ref.dtype), w2_ref[...],
                                preferred_element_type=jnp.float32)

        @pl.when(k == pl.num_programs(1) - 1)
        def _finalize():
            o_ref[...] = (acc_ref[...] + b2_ref[...].astype(jnp.float32)
                          ).astype(o_ref.dtype)

    return kernel


def feed_forward(x, w1, b1, w2, b2, *, row_tile=None, hidden_tile=None,
                 weight_dtype=None, approximate_gelu=False):
    """x: (..., dim). w1: (dim, 2*hidden), b1: (2*hidden,), w2: (hidden, dim), b2: (dim,).

    Weights are stored (in_features, out_features) -- transposed relative to
    torch.nn.Linear's (out, in) -- so the kernel computes x @ W + b.
    """
    orig_shape = x.shape
    dim = orig_shape[-1]
    hidden = w2.shape[0]
    assert w1.shape == (dim, 2 * hidden)
    assert b1.shape == (2 * hidden,)
    assert w2.shape == (hidden, dim)
    assert b2.shape == (dim,)

    if weight_dtype is not None:
        w1 = w1.astype(weight_dtype)
        w2 = w2.astype(weight_dtype)

    xf = x.reshape(-1, dim)
    n_rows = xf.shape[0]
    out_dtype = x.dtype
    use_acc = jnp.dtype(out_dtype) != jnp.dtype(jnp.float32)

    # ---- generation-aware tile defaults ------------------------------------
    vmem_cap = _vmem_capacity_bytes()
    small_vmem = vmem_cap <= (80 << 20)          # v7x-class (64 MiB)
    if row_tile is None:
        row_tile = 512 if small_vmem else 1024   # AI knob: FLOP/byte ~ tm
    if hidden_tile is None:
        hidden_tile = 256 if small_vmem else 512

    dim_p = _round_up(dim, 128)
    th = _round_up(min(hidden_tile, _round_up(hidden, 128)), 128)
    tm = _round_up(min(row_tile, _round_up(n_rows, 8)), 8)

    isz_x = jnp.dtype(x.dtype).itemsize
    isz_w = jnp.dtype(w1.dtype).itemsize
    isz_b = jnp.dtype(b1.dtype).itemsize
    isz_o = jnp.dtype(out_dtype).itemsize

    def _vmem_bytes(tm_, th_):
        per_step = (tm_ * dim_p * isz_x           # x tile
                    + dim_p * 2 * th_ * isz_w     # fused W1 chunk [a | gate]
                    + th_ * dim_p * isz_w         # W2 chunk
                    + dim_p * isz_b               # b2
                    + tm_ * dim_p * isz_o)        # output tile
        resident = 2 * _round_up(hidden, th_) * isz_b   # fused b1, whole
        acc = tm_ * dim_p * 4 if use_acc else 0
        return 2 * per_step + 2 * resident + acc  # x2: double-buffered pipeline

    # ---- shrink tiles until the working set fits physical VMEM -------------
    budget = max(vmem_cap - (16 << 20), 16 << 20)
    while _vmem_bytes(tm, th) > budget and tm > 64:
        tm = max(64, _round_up(tm // 2, 8))
    while _vmem_bytes(tm, th) > budget and th > 128:
        th = max(128, _round_up(th // 2, 128))

    # ---- >= 2 row tiles when rows allow (feed both v7x TensorCores) --------
    if n_rows >= 16 and _round_up(n_rows, tm) == tm:
        tm = min(tm, max(8, _round_up((n_rows + 1) // 2, 8)))

    hidden_p = _round_up(hidden, th)
    n_ht = hidden_p // th
    n_rows_p = _round_up(n_rows, tm)

    # ---- prep operands; skip pad copies when already aligned ---------------
    if n_rows_p == n_rows and dim_p == dim:
        xp = xf
    else:
        xp = jnp.zeros((n_rows_p, dim_p), x.dtype).at[:n_rows, :dim].set(xf)

    w1a, w1g = w1[:, :hidden], w1[:, hidden:]
    b1a, b1g = b1[:hidden], b1[hidden:]
    if dim_p == dim and hidden_p == hidden:
        w1a_p, w1g_p, w2_p = w1a, w1g, w2
        b1a_p, b1g_p = b1a, b1g
    else:
        w1a_p = jnp.zeros((dim_p, hidden_p), w1.dtype).at[:dim, :hidden].set(w1a)
        w1g_p = jnp.zeros((dim_p, hidden_p), w1.dtype).at[:dim, :hidden].set(w1g)
        w2_p = jnp.zeros((hidden_p, dim_p), w2.dtype).at[:hidden, :dim].set(w2)
        b1a_p = jnp.zeros((hidden_p,), b1.dtype).at[:hidden].set(b1a)
        b1g_p = jnp.zeros((hidden_p,), b1.dtype).at[:hidden].set(b1g)

    # Fused per-tile layout: chunk k of W1 holds [a_k | gate_k] side by side.
    w1_fused = jnp.concatenate(
        [w1a_p.reshape(dim_p, n_ht, th), w1g_p.reshape(dim_p, n_ht, th)],
        axis=-1).reshape(dim_p, 2 * hidden_p)
    b1_fused = jnp.concatenate(
        [b1a_p.reshape(n_ht, th), b1g_p.reshape(n_ht, th)], axis=-1)  # (n_ht, 2*th)

    if dim_p == dim:
        b2_p = b2.reshape(1, dim)
    else:
        b2_p = jnp.zeros((1, dim_p), b2.dtype).at[0, :dim].set(b2)

    grid = (n_rows_p // tm, hidden_p // th)  # rows parallel, hidden reduction last

    est = _vmem_bytes(tm, th)
    vmem_limit = int(min(max(est + (8 << 20), 32 << 20), vmem_cap - (8 << 20)))

    scratch_shapes = [pltpu.VMEM((tm, dim_p), jnp.float32)] if use_acc else []
    kernel = _make_ffn_kernel(th, use_acc, approximate_gelu)

    out = pl.pallas_call(
        kernel,
        out_shape=jax.ShapeDtypeStruct((n_rows_p, dim_p), out_dtype),
        grid_spec=pltpu.PrefetchScalarGridSpec(
            num_scalar_prefetch=0,
            grid=grid,
            in_specs=[
                pl.BlockSpec((tm, dim_p), lambda i, k: (i, 0)),        # x tile
                pl.BlockSpec((dim_p, 2 * th), lambda i, k: (0, k)),    # fused W1 chunk
                pl.BlockSpec((n_ht, 2 * th), lambda i, k: (0, 0)),     # b1 (resident)
                pl.BlockSpec((th, dim_p), lambda i, k: (k, 0)),        # W2 chunk
                pl.BlockSpec((1, dim_p), lambda i, k: (0, 0)),         # b2 (resident)
            ],
            out_specs=pl.BlockSpec((tm, dim_p), lambda i, k: (i, 0)),
            scratch_shapes=scratch_shapes,
        ),
        compiler_params=pltpu.CompilerParams(
            dimension_semantics=("parallel", "arbitrary"),
            vmem_limit_bytes=vmem_limit,
        ),
    )(xp, w1_fused, b1_fused, w2_p, b2_p)

    if n_rows_p == n_rows and dim_p == dim:
        return out.reshape(orig_shape)
    return out[:n_rows, :dim].reshape(orig_shape)


def init_feed_forward_params(key, dim, mult=4, dtype=jnp.float32):
    """Deterministic init mirroring torch.nn.Linear shapes (weights stored transposed)."""
    hidden = dim * mult
    k1, k2, k3, k4 = jax.random.split(key, 4)
    lim1 = 1.0 / jnp.sqrt(dim)
    lim2 = 1.0 / jnp.sqrt(hidden)
    w1 = jax.random.uniform(k1, (dim, 2 * hidden), dtype, -lim1, lim1)
    b1 = jax.random.uniform(k2, (2 * hidden,), dtype, -lim1, lim1)
    w2 = jax.random.uniform(k3, (hidden, dim), dtype, -lim2, lim2)
    b2 = jax.random.uniform(k4, (dim,), dtype, -lim2, lim2)
    return w1, b1, w2, b2


def _reference(x, w1, b1, w2, b2):
    """Pure-JAX reference matching the PyTorch module."""
    h = x @ w1 + b1
    a, g = jnp.split(h, 2, axis=-1)
    z = a * jax.nn.gelu(g, approximate=False)
    return z @ w2 + b2


if __name__ == "__main__":
    batch, seq, dim, mult = 2, 8, 32, 4

    key = jax.random.PRNGKey(0)
    kx, kp = jax.random.split(key)
    x = jax.random.normal(kx, (batch, seq, dim), dtype=jnp.float32)
    w1, b1, w2, b2 = init_feed_forward_params(kp, dim, mult)

    out = feed_forward(x, w1, b1, w2, b2)
    out = jax.block_until_ready(out)

    ref = _reference(x, w1, b1, w2, b2)
    assert out.shape == (batch, seq, dim)
    assert jnp.allclose(out, ref, atol=1e-4, rtol=1e-4), "mismatch vs reference"

    print("KERNEL_OK")
</pallas_src>

<mosaic_0001>
module attributes {stable_mosaic.version = 11 : i64} {
  func.func @kernel(%arg0: i32, %arg1: i32, %arg2: memref<8x128xf32, #tpu.memory_space<vmem>>, %arg3: memref<128x256xf32, #tpu.memory_space<vmem>>, %arg4: memref<1x256xf32, #tpu.memory_space<vmem>>, %arg5: memref<128x128xf32, #tpu.memory_space<vmem>>, %arg6: memref<1x128xf32, #tpu.memory_space<vmem>>, %arg7: memref<8x128xf32, #tpu.memory_space<vmem>>) attributes {dimension_semantics = [#tpu.dimension_semantics<parallel>, #tpu.dimension_semantics<arbitrary>], iteration_bounds = array<i64: 2, 1>, scalar_prefetch = 0 : i64, scratch_operands = 0 : i64, tpu.core_type = #tpu.core_type<tc>, window_params = [{transform_indices = @transform_0, window_bounds = array<i64: 8, 128>}, {transform_indices = @transform_1, window_bounds = array<i64: 128, 256>}, {pipeline_mode = #tpu.pipeline_mode<synchronous>, transform_indices = @transform_2, window_bounds = array<i64: 1, 256>}, {transform_indices = @transform_3, window_bounds = array<i64: 128, 128>}, {pipeline_mode = #tpu.pipeline_mode<synchronous>, transform_indices = @transform_4, window_bounds = array<i64: 1, 128>}, {transform_indices = @transform_5, window_bounds = array<i64: 8, 128>}]} {
    %c0_i32 = arith.constant 0 : i32
    %0 = arith.cmpi eq, %arg1, %c0_i32 : i32
    %1 = arith.extui %0 : i1 to i32
    %c0_i32_0 = arith.constant 0 : i32
    %2 = arith.cmpi ne, %1, %c0_i32_0 : i32
    scf.if %2 {
      %cst_17 = arith.constant 0.000000e+00 : f32
      %29 = vector.broadcast %cst_17 : f32 to vector<8x128xf32>
      %c0_18 = arith.constant 0 : index
      %c0_19 = arith.constant 0 : index
      %30 = vector.load %arg7[%c0_18, %c0_19] : memref<8x128xf32, #tpu.memory_space<vmem>>, vector<8x128xf32>
      tpu.vector_store %arg7[%c0_18, %c0_19], %29 {strides = array<i32>} : memref<8x128xf32, #tpu.memory_space<vmem>>, vector<8x128xf32>,
    } else {
    }
    %c0 = arith.constant 0 : index
    %c0_1 = arith.constant 0 : index
    %3 = vector.load %arg2[%c0, %c0_1] : memref<8x128xf32, #tpu.memory_space<vmem>>, vector<8x128xf32>
    %c0_2 = arith.constant 0 : index
    %c0_3 = arith.constant 0 : index
    %4 = vector.load %arg3[%c0_2, %c0_3] : memref<128x256xf32, #tpu.memory_space<vmem>>, vector<128x256xf32>
    %cst = arith.constant dense<0.000000e+00> : vector<8x256xf32>
    %5 = tpu.matmul %3, %4, %cst {dimension_numbers = #tpu.dot_dimension_numbers<[1], [0], [0], [1], [0, 0, 1, 1], [], []>} : vector<8x128xf32>, vector<128x256xf32>, vector<8x256xf32> -> vector<8x256xf32>
    %6 = arith.index_cast %arg1 : i32 to index
    %c0_4 = arith.constant 0 : index
    %7 = vector.load %arg4[%6, %c0_4] : memref<1x256xf32, #tpu.memory_space<vmem>>, vector<1x256xf32>
    %8 = vector.broadcast %7 : vector<1x256xf32> to vector<8x256xf32>
    %9 = arith.addf %5, %8 : vector<8x256xf32>
    %10 = vector.extract_strided_slice %9 {offsets = [0, 0], sizes = [8, 128], strides = [1, 1]} : vector<8x256xf32> to vector<8x128xf32>
    %11 = vector.extract_strided_slice %9 {offsets = [0, 128], sizes = [8, 128], strides = [1, 1]} : vector<8x256xf32> to vector<8x128xf32>
    %cst_5 = arith.constant 5.000000e-01 : f32
    %12 = vector.broadcast %cst_5 : f32 to vector<8x128xf32>
    %13 = arith.mulf %12, %11 : vector<8x128xf32>
    %cst_6 = arith.constant 0.707106769 : f32
    %14 = vector.broadcast %cst_6 : f32 to vector<8x128xf32>
    %15 = arith.mulf %11, %14 : vector<8x128xf32>
    %16 = math.erf %15 : vector<8x128xf32>
    %cst_7 = arith.constant 1.000000e+00 : f32
    %17 = vector.broadcast %cst_7 : f32 to vector<8x128xf32>
    %18 = arith.addf %17, %16 : vector<8x128xf32>
    %19 = arith.mulf %13, %18 : vector<8x128xf32>
    %20 = arith.mulf %10, %19 : vector<8x128xf32>
    %c0_8 = arith.constant 0 : index
    %c0_9 = arith.constant 0 : index
    %21 = vector.load %arg7[%c0_8, %c0_9] : memref<8x128xf32, #tpu.memory_space<vmem>>, vector<8x128xf32>
    %c0_10 = arith.constant 0 : index
    %c0_11 = arith.constant 0 : index
    %22 = vector.load %arg5[%c0_10, %c0_11] : memref<128x128xf32, #tpu.memory_space<vmem>>, vector<128x128xf32>
    %cst_12 = arith.constant dense<0.000000e+00> : vector<8x128xf32>
    %23 = tpu.matmul %20, %22, %cst_12 {dimension_numbers = #tpu.dot_dimension_numbers<[1], [0], [0], [1], [0, 0, 1, 1], [], []>} : vector<8x128xf32>, vector<128x128xf32>, vector<8x128xf32> -> vector<8x128xf32>
    %24 = arith.addf %21, %23 : vector<8x128xf32>
    %c0_13 = arith.constant 0 : index
    %c0_14 = arith.constant 0 : index
    %25 = vector.load %arg7[%c0_13, %c0_14] : memref<8x128xf32, #tpu.memory_space<vmem>>, vector<8x128xf32>
    tpu.vector_store %arg7[%c0_13, %c0_14], %24 {strides = array<i32>} : memref<8x128xf32, #tpu.memory_space<vmem>>, vector<8x128xf32>,
    %c0_i32_15 = arith.constant 0 : i32
    %26 = arith.cmpi eq, %arg1, %c0_i32_15 : i32
    %27 = arith.extui %26 : i1 to i32
    %c0_i32_16 = arith.constant 0 : i32
    %28 = arith.cmpi ne, %27, %c0_i32_16 : i32
    scf.if %28 {
      %c0_17 = arith.constant 0 : index
      %c0_18 = arith.constant 0 : index
      %29 = vector.load %arg7[%c0_17, %c0_18] : memref<8x128xf32, #tpu.memory_space<vmem>>, vector<8x128xf32>
      %c0_19 = arith.constant 0 : index
      %c0_20 = arith.constant 0 : index
      %30 = vector.load %arg6[%c0_19, %c0_20] : memref<1x128xf32, #tpu.memory_space<vmem>>, vector<1x128xf32>
      %31 = vector.broadcast %30 : vector<1x128xf32> to vector<8x128xf32>
      %32 = arith.addf %29, %31 : vector<8x128xf32>
      %c0_21 = arith.constant 0 : index
      %c0_22 = arith.constant 0 : index
      %33 = vector.load %arg7[%c0_21, %c0_22] : memref<8x128xf32, #tpu.memory_space<vmem>>, vector<8x128xf32>
      tpu.vector_store %arg7[%c0_21, %c0_22], %32 {strides = array<i32>} : memref<8x128xf32, #tpu.memory_space<vmem>>, vector<8x128xf32>,
    } else {
    }
    return
  }
  func.func @transform_0(%arg0: i32, %arg1: i32) -> (i32, i32) {
    %c0_i32 = arith.constant 0 : i32
    %c0_i32_0 = arith.constant 0 : i32
    return %arg0, %c0_i32 : i32, i32
  }
  func.func @transform_1(%arg0: i32, %arg1: i32) -> (i32, i32) {
    %c0_i32 = arith.constant 0 : i32
    %c0_i32_0 = arith.constant 0 : i32
    return %c0_i32, %arg1 : i32, i32
  }
  func.func @transform_2(%arg0: i32, %arg1: i32) -> (i32, i32) {
    %c0_i32 = arith.constant 0 : i32
    %c0_i32_0 = arith.constant 0 : i32
    %c0_i32_1 = arith.constant 0 : i32
    return %c0_i32, %c0_i32_0 : i32, i32
  }
  func.func @transform_3(%arg0: i32, %arg1: i32) -> (i32, i32) {
    %c0_i32 = arith.constant 0 : i32
    %c0_i32_0 = arith.constant 0 : i32
    return %arg1, %c0_i32 : i32, i32
  }
  func.func @transform_4(%arg0: i32, %arg1: i32) -> (i32, i32) {
    %c0_i32 = arith.constant 0 : i32
    %c0_i32_0 = arith.constant 0 : i32
    %c0_i32_1 = arith.constant 0 : i32
    return %c0_i32, %c0_i32_0 : i32, i32
  }
  func.func @transform_5(%arg0: i32, %arg1: i32) -> (i32, i32) {
    %c0_i32 = arith.constant 0 : i32
    %c0_i32_0 = arith.constant 0 : i32
    return %arg0, %c0_i32 : i32, i32
  }
}

</mosaic_0001>

<bundles_post_ra>
// kernel: tpu_custom_call.1
= control target key start
LH: loop header
LB: loop body
LE: loop exit
PB: predicated region body
PF: predicated region fallthrough
CT: control target
= control target key end

     0   :  { %10 = vsyncpa [#allocation3], 0  ;;  %s1353_s0 = inlined_call_operand.hbm [shape: f32[16,128], index: 0, kind: input, shape index: {}]   ;;  %s1354_s1 = inlined_call_operand.hbm [shape: f32[128,256], index: 1, kind: input, shape index: {}]   ;;  %s1355_s2 = inlined_call_operand.vmem [shape: f32[1,256], index: 2, kind: input, shape index: {}]   ;;  %s1356_s3 = inlined_call_operand.hbm [shape: f32[128,128], index: 3, kind: input, shape index: {}]   ;;  %s1357_s4 = inlined_call_operand.vmem [shape: f32[1,128], index: 4, kind: input, shape index: {}]   ;;  %s1358_s5 = inlined_call_operand.hbm [shape: f32[16,128], index: 5, kind: output, shape index: {}]  }
   0x1   :  { %12 = vsyncpa [#allocation3 + $0x1], 0 }
   0x2   :  { %13 = vsyncpa [#allocation6], 0 }
   0x3   :  { %14 = vsyncpa [#allocation4], 0 }
   0x4   :  { %16 = vsyncpa [#allocation4 + $0x1], 0  ;;  %s1080_s18 = smov 0   ;;  %s1082_s19 = smov 0  }
   0x5   :  { %s1084_s20 = smov 0   ;;  %s1086_s21 = smov 0  }
   0x6   :  { %s1088_s22 = smov 0   ;;  %s1090_s23 = smov 0  }
   0x7 LB: > { %s647_s24 = sadd.s32 4294967295, %s1037_s23   ;;  %s648_s25 = sadd.s32 4294967294, %s1037_s23   ;;  %s1037_s23 = sphi %s1090_s23, %s22_s23   ;;  %s1033_s22 = sphi %s1088_s22, %s1380_s22   ;;  %s1029_s21 = sphi %s1086_s21, %s1379_s21   ;;  %s1025_s20 = sphi %s1084_s20, %s1378_s20   ;;  %s1021_s19 = sphi %s1082_s19, %s1377_s19   ;;  %s1017_s18 = sphi %s1080_s18, %s1376_s18  }
   0x8   : > { %p54_p0 = scmp.ne.s32.totalorder %s1021_s19, %s1017_s18  ;;  %p1114_p1 = scmp.eq.s32.totalorder %s647_s24, 0 }
   0x9   : > { %p1118_p2 = scmp.eq.s32.totalorder %s647_s24, 1  ;;  %p178_p3 = scmp.eq.s32.totalorder %s648_s25, 1 }
   0xa   : > { %s1363_s26 = scalar_select %p1114_p1, 1, 0 }
   0xb   : > { %p1124_p4 = por %p1114_p1, %p54_p0  ;;  %p649_p5 = scmp.ge.s32.totalorder %s1037_s23, 1 }
   0xc   : > { %p1129_p6 = por %p178_p3, %p54_p0  ;;  %p185_p7 = scmp.lt.s32.totalorder %s1037_s23, 3 }
   0xd   : > { %s1365_s28 = scalar_select %p1124_p4, 1, 0 }
   0xe   : > { %s1366_s29 = scalar_select %p1129_p6, 1, 0 }
   0xf   : > { %p1134_p8 = pnand %p649_p5, %p185_p7  ;;  %s1039_s6 = smov [#allocation5]  }
  0x10   : > { %s200_s7 = sshll.u32 %s1039_s6, 4  ;;  %s1040_s9 = smov [#allocation7]   ;;  %s1138_s7 = int_to_ptr.vmem [resolvable:$true] %s200_s7 }
  0x11   : > { %p785_p9 = pneg %p1134_p8  ;;  %s219_s10 = sshll.u32 %s1040_s9, 4  ;;  %s1149_s10 = int_to_ptr.vmem [resolvable:$true] %s219_s10 }
  0x12   : > { %s865_s13 = scalar_lea.hbm %s1354_s1, 4096 }
  0x13   : > { %p1145_p11 = pnand %p785_p9, %p1114_p1  ;;  %p866_p12 = scmp.ne.s32.totalorder %s1354_s1, %s865_s13 }
  0x14   : > { %p872_p5 = scmp.lt.u32.totalorder %s865_s13, %s1354_s1 }
  0x15   : > { %p867_p13 = pneg %p1145_p11 }
  0x17   : > { %p868_p0 = pnand %p867_p13, %p866_p12 }
  0x19   : > { %p869_p3 = pneg %p868_p0 }
  0x1b   : > { %p874_p7 = pnand %p872_p5, %p869_p3 }
  0x1d   : > { %877 = shalt.err (!%p874_p7)
}
  0x1e   : > { %s878_s24 = scalar_lea.vmem %s1138_s7, 4096  ;;  %p886_p1 = scmp.lt.s32.totalorder %s1138_s7, %s1138_s7 }
  0x1f   : > { %p879_p9 = scmp.ne.s32.totalorder %s1138_s7, %s878_s24  ;;  %p887_p12 = scmp.lt.s32.totalorder %s878_s24, %s878_s24 }
  0x21   : > { %p881_p10 = pnand %p879_p9, %p867_p13  ;;  %p888_p0 = por %p887_p12, %p886_p1 }
  0x23   : > { %p882_p6 = pneg %p881_p10 }
  0x25   : > { %p889_p4 = pnand %p888_p0, %p882_p6 }
  0x27   : > { %892 = shalt.err (!%p889_p4)
}
  0x28   : > { %s1041_s25 = smov 256   ;;  %s1042_s6 = smov 16  }
  0x29   : > { %788 = dma.hbm_to_vmem [thread:$0]  (!%p1145_p11), %s1354_s1, 4096, %s1138_s7, [#allocation6], %s1041_s25, %s1041_s25, %s1042_s6  }
  0x2a   : > { %s893_s14 = scalar_lea.hbm %s1356_s3, 2048 }
  0x2b   : > { %p894_p1 = scmp.ne.s32.totalorder %s1356_s3, %s893_s14  ;;  %p900_p10 = scmp.lt.u32.totalorder %s893_s14, %s1356_s3 }
  0x2d   : > { %p896_p4 = pnand %p894_p1, %p867_p13 }
  0x2f   : > { %p897_p6 = pneg %p896_p4 }
  0x31   : > { %p902_p3 = pnand %p900_p10, %p897_p6 }
  0x33   : > { %905 = shalt.err (!%p902_p3)
}
  0x34   : > { %s906_s7 = scalar_lea.vmem %s1149_s10, 2048  ;;  %p914_p12 = scmp.lt.s32.totalorder %s1149_s10, %s1149_s10 }
  0x35   : > { %p907_p5 = scmp.ne.s32.totalorder %s1149_s10, %s906_s7  ;;  %p915_p0 = scmp.lt.s32.totalorder %s906_s7, %s906_s7 }
  0x37   : > { %p909_p7 = pnand %p907_p5, %p867_p13  ;;  %p916_p1 = por %p915_p0, %p914_p12 }
  0x39   : > { %p910_p9 = pneg %p909_p7 }
  0x3b   : > { %p917_p4 = pnand %p916_p1, %p910_p9 }
  0x3d   : > { %920 = shalt.err (!%p917_p4)
}
  0x3e   : > { %s1043_s25 = smov 128   ;;  %s1044_s6 = smov 8  }
  0x3f   : > { %791 = dma.hbm_to_vmem [thread:$0]  (!%p1145_p11), %s1356_s3, 2048, %s1149_s10, [#allocation6], %s1043_s25, %s1043_s25, %s1044_s6  }
  0x40   : > { %s34_s12 = sadd.s32 1, %s1033_s22  ;;  %s41_s13 = sadd.s32 1, %s1025_s20 }
  0x41   : > { %p36_p13 = scmp.ge.s32.totalorder %s34_s12, 2  ;;  %p48_p6 = scmp.ne.s32.totalorder %s1025_s20, %s1021_s19 }
  0x42   : > { %p49_p10 = scmp.eq.s32.totalorder %s1037_s23, 0  ;;  %p802_p3 = scmp.lt.s32.totalorder %s1037_s23, 2 }
  0x43   : > { %s1382_s12 = smov (%p36_p13, %s34_s12), 0  ;;  %p1213_p7 = por %p1118_p2, %p48_p6 }
  0x44   : > { %p50_p5 = por %p49_p10, %p48_p6  ;;  %s38_s8 = ssub.s32 %s1033_s22, %s1382_s12 }
  0x45   : > { %s1369_s14 = scalar_select %p1213_p7, 1, 0 }
  0x46   : > { %s236_s15 = sand.u32 1, %s1025_s20   ;;  %p39_p9 = scmp.eq.s32.totalorder %s38_s8, 0 }
  0x47   : > { %s653_s10 = sshll.u32 %s236_s15, 3  ;;  %s654_s16 = sshll.u32 %s1033_s22, 7 }
  0x48   : > { %s1222_s17 = scalar_select %p39_p9, %s1025_s20, %s41_s13  }
  0x49   : > { %s1227_s25 = scalar_lea.hbm %s1353_s0, %s654_s16  ;;  %s240_s27 = scalar_lea.vmem [#allocation2], %s653_s10 }
  0x4a   : > { %s247_s6 = sshll.u32 %s240_s27, 4  ;;  %p1231_p2 = pnand %p802_p3, %p50_p5  ;;  %s1235_s6 = int_to_ptr.vmem [resolvable:$true] %s247_s6 }
  0x4b   : > { %s237_s11 = scalar_lea.sflag [#allocation3], %s236_s15  ;;  %s921_s13 = scalar_lea.hbm %s1227_s25, 128 }
  0x4c   : > { %p922_p11 = scmp.ne.s32.totalorder %s1227_s25, %s921_s13  ;;  %p923_p12 = pneg %p1231_p2 }
  0x4d   : > { %s926_s16 = scalar_lea.hbm %s1353_s0, 256  ;;  %p927_p4 = scmp.lt.u32.totalorder %s1227_s25, %s1353_s0 }
  0x4e   : > { %p924_p0 = pnand %p923_p12, %p922_p11  ;;  %p928_p13 = scmp.lt.u32.totalorder %s926_s16, %s921_s13 }
  0x4f   : > { %p930_p10 = scmp.lt.u32.totalorder %s921_s13, %s1227_s25 }
  0x50   : > { %p925_p1 = pneg %p924_p0  ;;  %p929_p6 = por %p928_p13, %p927_p4 }
  0x52   : > { %p931_p3 = por %p930_p10, %p929_p6 }
  0x54   : > { %p932_p5 = pnand %p931_p3, %p925_p1 }
  0x56   : > { %935 = shalt.err (!%p932_p5)
}
  0x57   : > { %s936_s15 = scalar_lea.vmem %s1235_s6, 128  ;;  %s1045_s27 = smov [#allocation2]  }
  0x58   : > { %p937_p9 = scmp.ne.s32.totalorder %s1235_s6, %s936_s15  ;;  %s941_s8 = sshll.u32 %s1045_s27, 4  ;;  %s942_s8 = int_to_ptr.vmem [resolvable:$false] %s941_s8 }
  0x59   : > { %s943_s10 = scalar_lea.vmem %s942_s8, 256  ;;  %p944_p7 = scmp.lt.s32.totalorder %s1235_s6, %s942_s8 }
  0x5a   : > { %p939_p11 = pnand %p937_p9, %p923_p12  ;;  %p945_p4 = scmp.lt.s32.totalorder %s943_s10, %s936_s15 }
  0x5c   : > { %p940_p0 = pneg %p939_p11  ;;  %p946_p13 = por %p945_p4, %p944_p7 }
  0x5e   : > { %p947_p6 = pnand %p946_p13, %p940_p0 }
  0x60   : > { %950 = shalt.err (!%p947_p6)
}
  0x61   : > { %795 = dma.hbm_to_vmem [thread:$0]  (!%p1231_p2), %s1227_s25, 128, %s1235_s6, %s237_s11  }
  0x62   : > { %256 = sbr.rel (%p1134_p8) target bundleno = 606 (0x25e), region = 40  ;;  %s1265_s13 = sand.u32 (!%p1134_p8), 1, %s1021_s19  }
  0x63   : > { %s656_s16 = sshll.u32 (!%p1134_p8), %s1265_s13, 3  ;;  %s259_s24 = scalar_lea.sflag (!%p1134_p8), [#allocation3], %s1265_s13 }
  0x64   : > { %s1271_s7 = scalar_lea.vmem (!%p1134_p8), [#allocation2], %s656_s16  ;;  %p1371_p7 = scmp.ne.s32.totalorder (!%p1134_p8), %s1365_s28, 0 }
  0x69   : > { %1004 = dma.done.wait (%p1371_p7), %s259_s24, 128  }
  0x6a   : > { %1006 = vsyncadd (%p1371_p7), %s259_s24, 4294967168  ;;  %p1372_p2 = scmp.ne.s32.totalorder %s1363_s26, 0 }
  0x6c   : > { %1008 = dma.done.wait (%p1372_p2), [#allocation6], 6144  }
  0x6d   : > { %1010 = vsyncadd (%p1372_p2), [#allocation6], 4294961152  ;;  %v1046_v0 = vmov 0.0   ;;  %v1047_v1 = vmov 0.0|0.0   ;;  %v306_v2 = vld [vmem:[#allocation5 + $0x8] sm:$0xff]  ;;  %v308_v3 = vld [vmem:[#allocation5 + $0x18] sm:$0xff] }
  0x6e   : > { %415 = vmatprep.mubr.f32.mxu0 %v1046_v0  ;;  %749 = vmatprep.subr.bf16.mxu1 %v1047_v1  ;;  %v305_v4 = vld [vmem:[#allocation5] sm:$0xff]  ;;  %v717_v5 = vpack.c.bf16 %v308_v3, %v306_v2  ;;  %v307_v6 = vld [vmem:[#allocation5 + $0x10] sm:$0xff]  ;;  %v310_v7 = vld [vmem:[#allocation5 + $0x28] sm:$0xff]  ;;  %vm1048_vm0 = vmmov 0   ;;  %s662_s6 = sshll.u32 %s1029_s21, 7  ;;  %s296_s9 = scalar_lea.vmem [#allocation8], %s656_s16 }
  0x6f   : > { %v312_v8 = vld [vmem:[#allocation5 + $0x38] sm:$0xff]  ;;  %v719_v9 = vpack.c.bf16 %v307_v6, %v305_v4  ;;  %v309_v11 = vld [vmem:[#allocation5 + $0x20] sm:$0xff]  ;;  %v311_v12 = vld [vmem:[#allocation5 + $0x30] sm:$0xff]  ;;  %714 = vmatprep.mubr.msk.f32.mxu1 %vm1048_vm0, %v1046_v0  ;;  %s544_s11 = sshll.u32 %s296_s9, 4  ;;  %s1304_s8 = scalar_lea.hbm %s1358_s5, %s662_s6  ;;  %s1306_s11 = int_to_ptr.vmem [resolvable:$true] %s544_s11 }
  0x70   : > { %v721_v10 = vpack.c.bf16 %v312_v8, %v310_v7  ;;  %v314_v13 = vld [vmem:[#allocation5 + $0x48] sm:$0xff]  ;;  %718 = vmatprep.subr.bf16.mxu0 %v717_v5  ;;  %v316_v14 = vld [vmem:[#allocation5 + $0x58] sm:$0xff]  ;;  %v723_v15 = vpack.c.bf16 %v311_v12, %v309_v11  ;;  %v313_v17 = vld [vmem:[#allocation5 + $0x40] sm:$0xff]  ;;  %s531_s10 = scalar_lea.sflag [#allocation4], %s1265_s13  ;;  %s951_s24 = scalar_lea.vmem %s1306_s11, 128 }
  0x71   : > { %720 = vmatpush1.bf16.msra.mxu0 %v719_v9  ;;  %v725_v16 = vpack.c.bf16 %v316_v14, %v314_v13  ;;  %v315_v18 = vld [vmem:[#allocation5 + $0x50] sm:$0xff]  ;;  %v318_v19 = vld [vmem:[#allocation5 + $0x68] sm:$0xff]  ;;  %v320_v20 = vld [vmem:[#allocation5 + $0x78] sm:$0xff]  ;;  %v341_v13 = vlaneseq  ;;  %p952_p8 = scmp.ne.s32.totalorder %s1306_s11, %s951_s24  ;;  %p1373_p12 = scmp.ne.s32.totalorder %s1369_s14, 0 }
  0x72   : > { %722 = vmatprep.subr.bf16.mxu0 %v721_v10  ;;  %v727_v21 = vpack.c.bf16 %v315_v18, %v313_v17  ;;  %v729_v22 = vpack.c.bf16 %v320_v20, %v318_v19  ;;  %v317_v23 = vld [vmem:[#allocation5 + $0x60] sm:$0xff]  ;;  %v319_v24 = vld [vmem:[#allocation5 + $0x70] sm:$0xff]  ;;  %v322_v25 = vld [vmem:[#allocation5 + $0x88] sm:$0xff]  ;;  %s1049_s21 = smov [#allocation8]  }
  0x73   : > { %v324_v26 = vld [vmem:[#allocation5 + $0x98] sm:$0xff]  ;;  %v429_v27 = vld [vmem:[#allocation7] sm:$0xff]  ;;  %v430_v28 = vld [vmem:[#allocation7 + $0x8] sm:$0xff]  ;;  %v731_v30 = vpack.c.bf16 %v319_v24, %v317_v23  ;;  %v342_v14 = vshrl.u32 %v341_v13, 7  ;;  %p953_p1 = pnand %p952_p8, %p1373_p12  ;;  %s955_s16 = sshll.u32 %s1049_s21, 4  ;;  %s956_s16 = int_to_ptr.vmem [resolvable:$false] %s955_s16 }
  0x74   : > { %v431_v29 = vld [vmem:[#allocation7 + $0x10] sm:$0xff]  ;;  %v750_v31 = vpack.c.bf16 %v430_v28, %v429_v27  ;;  %v432_v32 = vld [vmem:[#allocation7 + $0x18] sm:$0xff]  ;;  %v733_v33 = vpack.c.bf16 %v324_v26, %v322_v25  ;;  %v321_v34 = vld [vmem:[#allocation5 + $0x80] sm:$0xff]  ;;  %p958_p3 = scmp.lt.s32.totalorder %s1306_s11, %s956_s16 }
  0x75   : > { %724 = vmatpush1.bf16.msra.mxu0 %v723_v15  ;;  %v323_v35 = vld [vmem:[#allocation5 + $0x90] sm:$0xff]  ;;  %v326_v36 = vld [vmem:[#allocation5 + $0xa8] sm:$0xff]  ;;  %v328_v37 = vld [vmem:[#allocation5 + $0xb8] sm:$0xff]  ;;  %v753_v38 = vpack.c.bf16 %v432_v32, %v431_v29  ;;  %v347_v15 = vsub.s32 1, %v342_v14  ;;  %p954_p10 = pneg %p953_p1 }
  0x76   : > { %726 = vmatprep.subr.bf16.mxu0 %v725_v16  ;;  %751 = vmatpush3.bf16.msra.mxu1 %v750_v31  ;;  %v735_v39 = vpack.c.bf16 %v323_v35, %v321_v34  ;;  %v737_v40 = vpack.c.bf16 %v328_v37, %v326_v36  ;;  %v325_v41 = vld [vmem:[#allocation5 + $0xa0] sm:$0xff]  ;;  %v327_v42 = vld [vmem:[#allocation5 + $0xb0] sm:$0xff]  ;;  %v330_v43 = vld [vmem:[#allocation5 + $0xc8] sm:$0xff] }
  0x77   : > { %752 = vmatprep.subr.bf16.mxu1 %v1047_v1  ;;  %v332_v44 = vld [vmem:[#allocation5 + $0xd8] sm:$0xff]  ;;  %v739_v45 = vpack.c.bf16 %v327_v42, %v325_v41  ;;  %v329_v47 = vld [vmem:[#allocation5 + $0xc0] sm:$0xff]  ;;  %v331_v48 = vld [vmem:[#allocation5 + $0xd0] sm:$0xff] }
  0x78   : > { %v741_v46 = vpack.c.bf16 %v332_v44, %v330_v43  ;;  %v334_v49 = vld [vmem:[#allocation5 + $0xe8] sm:$0xff]  ;;  %v336_v50 = vld [vmem:[#allocation5 + $0xf8] sm:$0xff]  ;;  %v743_v51 = vpack.c.bf16 %v331_v48, %v329_v47  ;;  %v333_v53 = vld [vmem:[#allocation5 + $0xe0] sm:$0xff] }
  0x79   : > { %728 = vmatpush1.bf16.msra.mxu0 %v727_v21  ;;  %v745_v52 = vpack.c.bf16 %v336_v50, %v334_v49  ;;  %v335_v54 = vld [vmem:[#allocation5 + $0xf0] sm:$0xff]  ;;  %v433_v57 = vld [vmem:[#allocation7 + $0x20] sm:$0xff]  ;;  %v434_v58 = vld [vmem:[#allocation7 + $0x28] sm:$0xff]  ;;  %v343_v21 = vsub.s32 0, %v342_v14 }
  0x7a   : > { %730 = vmatprep.subr.bf16.mxu0 %v729_v22  ;;  %754 = vmatpush3.bf16.msra.mxu1 %v753_v38  ;;  %v747_v55 = vpack.c.bf16 %v335_v54, %v333_v53  ;;  %v304_v56 = vld [vmem:[%s1271_s7] sm:$0xff]  ;;  %v756_v59 = vpack.c.bf16 %v434_v58, %v433_v57  ;;  %v437_v63 = vld [vmem:[#allocation7 + $0x40] sm:$0xff]  ;;  %v438_v2 = vld [vmem:[#allocation7 + $0x48] sm:$0xff]  ;;  %s957_s7 = scalar_lea.vmem %s956_s16, 256 }
  0x7b   : > { %755 = vmatprep.subr.bf16.mxu1 %v1047_v1  ;;  %v435_v60 = vld [vmem:[#allocation7 + $0x30] sm:$0xff]  ;;  %v436_v61 = vld [vmem:[#allocation7 + $0x38] sm:$0xff]  ;;  %v762_v3 = vpack.c.bf16 %v438_v2, %v437_v63  ;;  %v441_v7 = vld [vmem:[#allocation7 + $0x60] sm:$0xff]  ;;  %p959_p5 = scmp.lt.s32.totalorder %s957_s7, %s951_s24 }
  0x7c   : > { %v759_v62 = vpack.c.bf16 %v436_v61, %v435_v60  ;;  %v439_v4 = vld [vmem:[#allocation7 + $0x50] sm:$0xff]  ;;  %v440_v5 = vld [vmem:[#allocation7 + $0x58] sm:$0xff]  ;;  %v442_v8 = vld [vmem:[#allocation7 + $0x68] sm:$0xff] }
  0x7d   : > { %732 = vmatpush1.bf16.msra.mxu0 %v731_v30  ;;  %v765_v6 = vpack.c.bf16 %v440_v5, %v439_v4  ;;  %v768_v9 = vpack.c.bf16 %v442_v8, %v441_v7  ;;  %v443_v10 = vld [vmem:[#allocation7 + $0x70] sm:$0xff]  ;;  %v444_v11 = vld [vmem:[#allocation7 + $0x78] sm:$0xff]  ;;  %p960_p9 = por %p959_p5, %p958_p3 }
  0x7e   : > { %734 = vmatprep.subr.bf16.mxu0 %v733_v33  ;;  %757 = vmatpush3.bf16.msra.mxu1 %v756_v59  ;;  %v771_v12 = vpack.c.bf16 %v444_v11, %v443_v10  ;;  %v339_v16 = vld [vmem:[%s1355_s2] sm:$0x3] }
  0x7f   : > { %758 = vmatprep.subr.bf16.mxu1 %v1047_v1  ;;  %v348_v17 = vrot.slane %v339_v16, %v347_v15  ;;  %v344_v22 = vrot.slane %v339_v16, %v343_v21  ;;  %v660_v29 = vld [vmem:[%s1357_s4] ss:$0 sm:$0xff]  ;;  %p961_p11 = pnand %p960_p9, %p954_p10 }
  0x81   : > { %736 = vmatpush1.bf16.msra.mxu0 %v735_v39 }
  0x82   : > { %738 = vmatprep.subr.bf16.mxu0 %v737_v40  ;;  %760 = vmatpush3.bf16.msra.mxu1 %v759_v62 }
  0x83   : > { %761 = vmatprep.subr.bf16.mxu1 %v1047_v1 }
  0x85   : > { %740 = vmatpush1.bf16.msra.mxu0 %v739_v45 }
  0x86   : > { %742 = vmatprep.subr.bf16.mxu0 %v741_v46  ;;  %763 = vmatpush3.bf16.msra.mxu1 %v762_v3 }
  0x87   : > { %764 = vmatprep.subr.bf16.mxu1 %v1047_v1 }
  0x89   : > { %744 = vmatpush1.bf16.msra.mxu0 %v743_v51 }
  0x8a   : > { %746 = vmatprep.subr.bf16.mxu0 %v745_v52  ;;  %766 = vmatpush3.bf16.msra.mxu1 %v765_v6 }
  0x8b   : > { %767 = vmatprep.subr.bf16.mxu1 %v1047_v1 }
  0x8d   : > { %748 = vmatpush1.bf16.msra.mxu0 %v747_v55 }
  0x8e   : > { %769 = vmatpush3.bf16.msra.mxu1 %v768_v9 }
  0x8f   : > { %770 = vmatprep.subr.bf16.mxu1 %v1047_v1 }
  0x90   : > { %416 = vmatmul.mubr.f32.vlgmr.msra.gmra.mrb[0].mxu0 %v304_v56 }
  0x92   : > { %772 = vmatpush3.bf16.msra.mxu1 %v771_v12 }
 0x163   : > { %v417_v18 = vpop.f32.mrb[0].mxu0 }
 0x164   : > { %v419_v19 = vpop.f32.mrb[1].mxu0  ;;  %v418_v25 = vadd.f32 %v417_v18, %v344_v22 }
 0x165   : > { %v420_v1 = vadd.f32 %v419_v19, %v348_v17 }
 0x167   : > { %v423_v20 = vmul.f32 0.70710677, %v420_v1  ;;  %v422_v24 = vmul.f32 0.5, %v420_v1 }
 0x169   : > { %863 = verf.f32 %v423_v20 }
 0x173   : > { %v864_v23 = vpop.eup %863 }
 0x174   : > { %v425_v0 = vadd.f32 1.0, %v864_v23 }
 0x176   : > { %v426_v26 = vmul.f32 %v425_v0, %v422_v24 }
 0x178   : > { %v427_v27 = vmul.f32 %v426_v26, %v418_v25 }
 0x17a   : > { %715 = vmatmul.mubr.f32.vlgmr.msra.gmra.mrb[0].mxu1 %v427_v27 }
 0x24d   : > { %v511_v28 = vpop.f32.mrb[0].mxu1 }
 0x24e   : > { %v716_v30 = vpop.f32.mrb[1].mxu1  ;;  %v528_v31 = vadd.f32 %v660_v29, %v511_v28 }
 0x250   : > { %529 = vst [vmem:[%s296_s9] sm:$0xff] %v528_v31 }
 0x251   : > { %964 = shalt.err (!%p961_p11)
}
 0x252   : > { %s965_s13 = scalar_lea.hbm %s1304_s8, 128  ;;  %s969_s30 = scalar_lea.hbm %s1358_s5, 256 }
 0x253   : > { %p966_p0 = scmp.ne.s32.totalorder %s1304_s8, %s965_s13  ;;  %p970_p6 = scmp.lt.u32.totalorder %s1304_s8, %s1358_s5 }
 0x254   : > { %p971_p7 = scmp.lt.u32.totalorder %s969_s30, %s965_s13  ;;  %p973_p8 = scmp.lt.u32.totalorder %s965_s13, %s1304_s8 }
 0x255   : > { %p967_p4 = pnand %p966_p0, %p1373_p12 }
 0x256   : > { %p972_p2 = por %p971_p7, %p970_p6 }
 0x257   : > { %p968_p13 = pneg %p967_p4 }
 0x258   : > { %p974_p1 = por %p973_p8, %p972_p2 }
 0x25a   : > { %p975_p10 = pnand %p974_p1, %p968_p13 }
 0x25c   : > { %978 = shalt.err (!%p975_p10)
}
 0x25d   : > { %783 = dma.vmem_to_hbm [thread:$0]  (%p1373_p12), %s1306_s11, 128, %s1304_s8, %s531_s10  }
 0x25e PF: > { %s556_s9 = sand.u32 1, %s1017_s18   ;;  %p1374_p3 = scmp.ne.s32.totalorder %s1366_s29, 0 }
 0x25f   : > { %p1375_p5 = scmp.ge.s32.totalorder %s1037_s23, 2  ;;  %s557_s15 = scalar_lea.sflag [#allocation4], %s556_s9 }
 0x261   : > { %p797_p9 = pnand %p1375_p5, %p1374_p3 }
 0x263   : > { %1012 = dma.done.wait (!%p797_p9), %s557_s15, 128  }
 0x264   : > { %1014 = vsyncadd (!%p797_p9), %s557_s15, 4294967168  ;;  %s22_s23 = sadd.s32 1, %s1037_s23   ;;  %s1376_s18 = smov %s1021_s19 }
 0x265   : > { %p19_p11 = scmp.ge.s32.totalorder %s22_s23, 4   ;;  %s1377_s19 = smov %s1025_s20 }
 0x266   : > { %s1378_s20 = smov %s1222_s17  ;;  %s1379_s21 = smov %s1033_s22 }
 0x267   : > { %s1380_s22 = smov %s1382_s12  ;;  %21 = sbr.rel (!%p19_p11) target bundleno = 7 (0x7), region = 104 }
 0x26e   :  { %562 = vsyncpa [#allocation3], 1 }
 0x26f   :  { %564 = vsyncpa [#allocation3 + $0x1], 1 }
 0x270   :  { %565 = vsyncpa [#allocation6], 1 }
 0x271   :  { %566 = vsyncpa [#allocation4], 1 }
 0x272   :  { %568 = vsyncpa [#allocation4 + $0x1], 1 }

</bundles_post_ra>
